<compile_context>
chip_gen: v7x
topology: tpu7x:2x2x1
jax: 0.10.0
libtpu: 0.0.40
codegen_flags: <defaults>
</compile_context>

<pallas_src>
import functools

import jax
import jax.numpy as jnp
from jax.experimental import pallas as pl
from jax.experimental.pallas import tpu as pltpu


def _mlp_kernel(x_ref, w1_ref, b1_ref, w2_ref, b2_ref, w3_ref, b3_ref, o_ref):
    # x_ref : (1, L)   flattened elements on lanes
    # w1_ref: (K, 1)   b1_ref: (K, 1)
    # w2_ref: (K, K)   b2_ref: (K, 1)
    # w3_ref: (1, K)   b3_ref: (1, 1)
    # o_ref : (1, L)
    x = x_ref[...]                                             # (1, L)

    # layer1: Linear(1, K) == outer-product broadcast on the VPU -> h1^T (K, L).
    # TODO(synk): if a bundle dump shows VALU (co-)binding, fuse this into the
    # MXU via Xaug=(2,L) with a ones row and W1aug=[w1|b1] (K,2).
    h = jnp.tanh(w1_ref[...] * x + b1_ref[...])                # (K, L)

    # layer2: Linear(K, K): h2^T = W2 @ h1^T on the MXU (full-width free dim L)
    h = jnp.tanh(
        jnp.dot(w2_ref[...], h, preferred_element_type=jnp.float32)
        + b2_ref[...]
    )                                                          # (K, L)

    # layer3: Linear(K, 1): single MXU matvec-row instead of VPU mul +
    # 32-sublane reduce (keeps the VALU/XLU free; MXU has huge slack at K=32).
    o_ref[...] = (
        jnp.dot(w3_ref[...], h, preferred_element_type=jnp.float32)
        + b3_ref[...]
    )                                                          # (1, L)


@functools.partial(jax.jit, static_argnames=("tile_lanes",))
def kernel_forward(x, params, tile_lanes=32768):
    """Apply the pointwise MLP `Kernel` to x (any shape); returns same shape (f32)."""
    w1, b1, w2, b2, w3, b3 = params                            # PyTorch layouts
    k = w2.shape[0]
    orig_shape = x.shape

    x_flat = x.reshape(-1).astype(jnp.float32)
    n = x_flat.shape[0]

    # Balanced 128-aligned lane tiles: split round_up(n,128) into near-equal
    # blocks (pad waste < 128 lanes/step), never exceed tile_lanes, and keep a
    # >= 2-step grid when possible so both v7x TensorCores are used.
    n128 = pl.cdiv(n, 128) * 128
    num_tiles = pl.cdiv(n128, int(tile_lanes))
    if n128 >= 256:
        num_tiles = max(num_tiles, 2)
    l = pl.cdiv(pl.cdiv(n128, num_tiles), 128) * 128
    grid = (pl.cdiv(n, l),)

    # No jnp.pad: Pallas clips the ragged last block (OOB reads are garbage but
    # stay in their own lanes -- every contraction is over K -- and OOB writes
    # are dropped), so HBM traffic stays at ~8 B/element.
    x_slab = x_flat.reshape(1, n)                              # elements on lanes

    # Transposed weight layout: K on sublanes.
    w1c = w1.reshape(k, 1).astype(jnp.float32)                 # (K, 1)
    b1c = b1.reshape(k, 1).astype(jnp.float32)                 # (K, 1)
    w2m = w2.astype(jnp.float32)                               # (K, K)  (h2^T = W2 @ h1^T)
    b2c = b2.reshape(k, 1).astype(jnp.float32)                 # (K, 1)
    w3r = w3.reshape(1, k).astype(jnp.float32)                 # (1, K)  row for MXU
    b3c = b3.reshape(1, 1).astype(jnp.float32)                 # (1, 1)

    full = lambda i: (0, 0)                                    # weights resident (loaded once)

    out = pl.pallas_call(
        _mlp_kernel,
        out_shape=jax.ShapeDtypeStruct((1, n), jnp.float32),
        grid_spec=pltpu.PrefetchScalarGridSpec(
            num_scalar_prefetch=0,
            grid=grid,
            in_specs=[
                pl.BlockSpec((1, l), lambda i: (0, i)),        # x tile (lane-dense)
                pl.BlockSpec((k, 1), full),                    # W1
                pl.BlockSpec((k, 1), full),                    # b1
                pl.BlockSpec((k, k), full),                    # W2
                pl.BlockSpec((k, 1), full),                    # b2
                pl.BlockSpec((1, k), full),                    # W3 row
                pl.BlockSpec((1, 1), full),                    # b3
            ],
            out_specs=pl.BlockSpec((1, l), lambda i: (0, i)),  # lane-dense output
        ),
        compiler_params=pltpu.CompilerParams(
            dimension_semantics=("parallel",),                 # megacore sharding on v7x
            vmem_limit_bytes=32 << 20,                         # (32, L) f32 temps @ L=32K ~ 8 MiB live
        ),
    )(x_slab, w1c, b1c, w2m, b2c, w3r, b3c)

    return out.reshape(orig_shape)


def init_params(n_kernel, key):
    """Deterministic init mimicking nn.Linear default (U[-1/sqrt(fan_in), +]).

    Returns weights in PyTorch layout:
      W1 (K,1), b1 (K,), W2 (K,K), b2 (K,), W3 (1,K), b3 (1,)
    """
    k1, k2, k3, k4, k5, k6 = jax.random.split(key, 6)

    def uni(k, shape, fan_in):
        bound = 1.0 / jnp.sqrt(jnp.float32(fan_in))
        return jax.random.uniform(
            k, shape, jnp.float32, minval=-bound, maxval=bound
        )

    w1 = uni(k1, (n_kernel, 1), 1)
    b1 = uni(k2, (n_kernel,), 1)
    w2 = uni(k3, (n_kernel, n_kernel), n_kernel)
    b2 = uni(k4, (n_kernel,), n_kernel)
    w3 = uni(k5, (1, n_kernel), n_kernel)
    b3 = uni(k6, (1,), n_kernel)
    return (w1, b1, w2, b2, w3, b3)


def reference_forward(x, params):
    """Pure-JAX reference matching the PyTorch forward."""
    w1, b1, w2, b2, w3, b3 = params
    orig_shape = x.shape
    h = x.reshape(-1, 1).astype(jnp.float32)
    h = jnp.tanh(h @ w1.T + b1)
    h = jnp.tanh(h @ w2.T + b2)
    y = h @ w3.T + b3
    return y.reshape(orig_shape)


if __name__ == "__main__":
    n_kernel = 32
    key = jax.random.PRNGKey(0)
    k_params, k_x1, k_x2, k_x3 = jax.random.split(key, 4)

    params = init_params(n_kernel, k_params)

    # Main example: small batched field, N = 2*4*16*16 = 2048 elements
    # (balanced into a 2-step grid of 1024 lanes each).
    x = jax.random.uniform(k_x1, (2, 4, 16, 16), jnp.float32)
    y = jax.block_until_ready(kernel_forward(x, params))
    y_ref = reference_forward(x, params)
    assert y.shape == x.shape
    err = float(jnp.max(jnp.abs(y - y_ref)))
    assert err < 1e-4, err

    # Ragged-tail + multi-step-grid check: N = 288 (not a multiple of 128),
    # small tile to force >1 step and a clipped last block.
    x2 = jax.random.uniform(k_x2, (4, 72), jnp.float32)
    y2 = jax.block_until_ready(kernel_forward(x2, params, tile_lanes=256))
    y2_ref = reference_forward(x2, params)
    assert y2.shape == x2.shape
    err2 = float(jnp.max(jnp.abs(y2 - y2_ref)))
    assert err2 < 1e-4, err2

    # Odd size with default tile: N = 485 -> balanced 2-step grid, ragged tail.
    x3 = jax.random.uniform(k_x3, (5, 97), jnp.float32)
    y3 = jax.block_until_ready(kernel_forward(x3, params))
    y3_ref = reference_forward(x3, params)
    assert y3.shape == x3.shape
    err3 = float(jnp.max(jnp.abs(y3 - y3_ref)))
    assert err3 < 1e-4, err3

    print("KERNEL_OK")
</pallas_src>

<mosaic_0001>
module attributes {stable_mosaic.version = 11 : i64} {
  func.func @_mlp_kernel(%arg0: i32, %arg1: memref<1x1024xf32, #tpu.memory_space<vmem>>, %arg2: memref<32x1xf32, #tpu.memory_space<vmem>>, %arg3: memref<32x1xf32, #tpu.memory_space<vmem>>, %arg4: memref<32x32xf32, #tpu.memory_space<vmem>>, %arg5: memref<32x1xf32, #tpu.memory_space<vmem>>, %arg6: memref<1x32xf32, #tpu.memory_space<vmem>>, %arg7: memref<1x1xf32, #tpu.memory_space<vmem>>, %arg8: memref<1x1024xf32, #tpu.memory_space<vmem>>) attributes {dimension_semantics = [#tpu.dimension_semantics<parallel>], iteration_bounds = array<i64: 2>, scalar_prefetch = 0 : i64, scratch_operands = 0 : i64, tpu.core_type = #tpu.core_type<tc>, window_params = [{transform_indices = @transform_0, window_bounds = array<i64: 1, 1024>}, {pipeline_mode = #tpu.pipeline_mode<synchronous>, transform_indices = @transform_1, window_bounds = array<i64: 32, 1>}, {pipeline_mode = #tpu.pipeline_mode<synchronous>, transform_indices = @transform_2, window_bounds = array<i64: 32, 1>}, {pipeline_mode = #tpu.pipeline_mode<synchronous>, transform_indices = @transform_3, window_bounds = array<i64: 32, 32>}, {pipeline_mode = #tpu.pipeline_mode<synchronous>, transform_indices = @transform_4, window_bounds = array<i64: 32, 1>}, {pipeline_mode = #tpu.pipeline_mode<synchronous>, transform_indices = @transform_5, window_bounds = array<i64: 1, 32>}, {pipeline_mode = #tpu.pipeline_mode<synchronous>, transform_indices = @transform_6, window_bounds = array<i64: 1, 1>}, {transform_indices = @transform_7, window_bounds = array<i64: 1, 1024>}]} {
    %c0 = arith.constant 0 : index
    %c0_0 = arith.constant 0 : index
    %0 = vector.load %arg1[%c0, %c0_0] : memref<1x1024xf32, #tpu.memory_space<vmem>>, vector<1x1024xf32>
    %c0_1 = arith.constant 0 : index
    %c0_2 = arith.constant 0 : index
    %1 = vector.load %arg2[%c0_1, %c0_2] : memref<32x1xf32, #tpu.memory_space<vmem>>, vector<32x1xf32>
    %2 = vector.broadcast %1 : vector<32x1xf32> to vector<32x1024xf32>
    %3 = vector.broadcast %0 : vector<1x1024xf32> to vector<32x1024xf32>
    %4 = arith.mulf %2, %3 : vector<32x1024xf32>
    %c0_3 = arith.constant 0 : index
    %c0_4 = arith.constant 0 : index
    %5 = vector.load %arg3[%c0_3, %c0_4] : memref<32x1xf32, #tpu.memory_space<vmem>>, vector<32x1xf32>
    %6 = vector.broadcast %5 : vector<32x1xf32> to vector<32x1024xf32>
    %7 = arith.addf %4, %6 : vector<32x1024xf32>
    %8 = math.tanh %7 : vector<32x1024xf32>
    %c0_5 = arith.constant 0 : index
    %c0_6 = arith.constant 0 : index
    %9 = vector.load %arg4[%c0_5, %c0_6] : memref<32x32xf32, #tpu.memory_space<vmem>>, vector<32x32xf32>
    %cst = arith.constant dense<0.000000e+00> : vector<32x1024xf32>
    %10 = tpu.matmul %9, %8, %cst {dimension_numbers = #tpu.dot_dimension_numbers<[1], [0], [0], [1], [0, 0, 1, 1], [], []>} : vector<32x32xf32>, vector<32x1024xf32>, vector<32x1024xf32> -> vector<32x1024xf32>
    %c0_7 = arith.constant 0 : index
    %c0_8 = arith.constant 0 : index
    %11 = vector.load %arg5[%c0_7, %c0_8] : memref<32x1xf32, #tpu.memory_space<vmem>>, vector<32x1xf32>
    %12 = vector.broadcast %11 : vector<32x1xf32> to vector<32x1024xf32>
    %13 = arith.addf %10, %12 : vector<32x1024xf32>
    %14 = math.tanh %13 : vector<32x1024xf32>
    %c0_9 = arith.constant 0 : index
    %c0_10 = arith.constant 0 : index
    %15 = vector.load %arg6[%c0_9, %c0_10] : memref<1x32xf32, #tpu.memory_space<vmem>>, vector<1x32xf32>
    %cst_11 = arith.constant dense<0.000000e+00> : vector<1x1024xf32>
    %16 = tpu.matmul %15, %14, %cst_11 {dimension_numbers = #tpu.dot_dimension_numbers<[1], [0], [0], [1], [0, 0, 1, 1], [], []>} : vector<1x32xf32>, vector<32x1024xf32>, vector<1x1024xf32> -> vector<1x1024xf32>
    %c0_12 = arith.constant 0 : index
    %c0_13 = arith.constant 0 : index
    %17 = vector.load %arg7[%c0_12, %c0_13] : memref<1x1xf32, #tpu.memory_space<vmem>>, vector<1x1xf32>
    %18 = vector.broadcast %17 : vector<1x1xf32> to vector<1x1024xf32>
    %19 = arith.addf %16, %18 : vector<1x1024xf32>
    %c0_14 = arith.constant 0 : index
    %c0_15 = arith.constant 0 : index
    %20 = vector.load %arg8[%c0_14, %c0_15] : memref<1x1024xf32, #tpu.memory_space<vmem>>, vector<1x1024xf32>
    tpu.vector_store %arg8[%c0_14, %c0_15], %19 {strides = array<i32>} : memref<1x1024xf32, #tpu.memory_space<vmem>>, vector<1x1024xf32>,
    return
  }
  func.func @transform_0(%arg0: i32) -> (i32, i32) {
    %c0_i32 = arith.constant 0 : i32
    %c0_i32_0 = arith.constant 0 : i32
    return %c0_i32, %arg0 : i32, i32
  }
  func.func @transform_1(%arg0: i32) -> (i32, i32) {
    %c0_i32 = arith.constant 0 : i32
    %c0_i32_0 = arith.constant 0 : i32
    %c0_i32_1 = arith.constant 0 : i32
    return %c0_i32, %c0_i32_0 : i32, i32
  }
  func.func @transform_2(%arg0: i32) -> (i32, i32) {
    %c0_i32 = arith.constant 0 : i32
    %c0_i32_0 = arith.constant 0 : i32
    %c0_i32_1 = arith.constant 0 : i32
    return %c0_i32, %c0_i32_0 : i32, i32
  }
  func.func @transform_3(%arg0: i32) -> (i32, i32) {
    %c0_i32 = arith.constant 0 : i32
    %c0_i32_0 = arith.constant 0 : i32
    %c0_i32_1 = arith.constant 0 : i32
    return %c0_i32, %c0_i32_0 : i32, i32
  }
  func.func @transform_4(%arg0: i32) -> (i32, i32) {
    %c0_i32 = arith.constant 0 : i32
    %c0_i32_0 = arith.constant 0 : i32
    %c0_i32_1 = arith.constant 0 : i32
    return %c0_i32, %c0_i32_0 : i32, i32
  }
  func.func @transform_5(%arg0: i32) -> (i32, i32) {
    %c0_i32 = arith.constant 0 : i32
    %c0_i32_0 = arith.constant 0 : i32
    %c0_i32_1 = arith.constant 0 : i32
    return %c0_i32, %c0_i32_0 : i32, i32
  }
  func.func @transform_6(%arg0: i32) -> (i32, i32) {
    %c0_i32 = arith.constant 0 : i32
    %c0_i32_0 = arith.constant 0 : i32
    %c0_i32_1 = arith.constant 0 : i32
    return %c0_i32, %c0_i32_0 : i32, i32
  }
  func.func @transform_7(%arg0: i32) -> (i32, i32) {
    %c0_i32 = arith.constant 0 : i32
    %c0_i32_0 = arith.constant 0 : i32
    return %c0_i32, %arg0 : i32, i32
  }
}

</mosaic_0001>

<bundles_post_ra>
// kernel: kernel_forward.1
= control target key start
LH: loop header
LB: loop body
LE: loop exit
PB: predicated region body
PF: predicated region fallthrough
CT: control target
= control target key end

     0   :  { %s1586_s26 = smov 0   ;;  %s1875_s0 = inlined_call_operand.vmem [shape: f32[1,2048], index: 0, kind: input, shape index: {}]   ;;  %s1876_s1 = inlined_call_operand.vmem [shape: f32[32,1], index: 1, kind: input, shape index: {}]   ;;  %s1877_s2 = inlined_call_operand.vmem [shape: f32[32,1], index: 2, kind: input, shape index: {}]   ;;  %s1878_s3 = inlined_call_operand.vmem [shape: f32[32,32], index: 3, kind: input, shape index: {}]   ;;  %s1879_s4 = inlined_call_operand.vmem [shape: f32[32,1], index: 4, kind: input, shape index: {}]   ;;  %s1880_s5 = inlined_call_operand.vmem [shape: f32[1,32], index: 5, kind: input, shape index: {}]   ;;  %s1881_s6 = inlined_call_operand.<no memory space> [shape: f32[1,1], index: 6, kind: input, shape index: {}]   ;;  %s1882_s7 = inlined_call_operand.vmem [shape: f32[1,2048], index: 7, kind: output, shape index: {}]  }
   0x1   :  { %v12_v0 = vstv %s1881_s6 }
   0x2   :  { %13 = vst [vmem:[#allocation2] sm:$0x1] %v12_v0 }
   0x3 LB: > { %s1298_s27 = sadd.s32 4294967295, %s1538_s26   ;;  %p1302_p0 = scmp.ge.s32.totalorder %s1538_s26, 1  ;;  %s1538_s26 = sphi %s1586_s26, %s19_s26  }
   0x4   : > { %p239_p1 = scmp.lt.s32.totalorder %s1538_s26, 3 }
   0x6   : > { %p240_p2 = pnand %p1302_p0, %p239_p1 }
   0x7   : > { %v377_v1 = vld [vmem:[%s1877_s2] sm:$0xff] (!%p240_p2)  ;;  %v1540_v3 = vmov (!%p240_p2), 0   ;;  %v378_v4 = vld [vmem:[%s1877_s2 + $0x8] sm:$0xff] (!%p240_p2)  ;;  %v283_v6 = vld [vmem:[%s1876_s1 + $0x18] sm:$0xff] (!%p240_p2)  ;;  %v1541_v15 = vmov (!%p240_p2), 0.0   ;;  %s1303_s6 = sshll.u32 (!%p240_p2), %s1298_s27, 3  ;;  %v305_v16 = vlaneseq (!%p240_p2) }
   0x8   : > { %243 = sbr.rel (%p240_p2) target bundleno = 660 (0x294), region = 48  ;;  %v280_v2 = vld [vmem:[%s1876_s1] sm:$0xff] (!%p240_p2)  ;;  %1403 = vset.pattern.permute.xlu1 (!%p240_p2), %v1540_v3  ;;  %1402 = vset.pattern.permute.xlu0 (!%p240_p2), %v1540_v3  ;;  %v281_v5 = vld [vmem:[%s1876_s1 + $0x8] sm:$0xff] (!%p240_p2)  ;;  %v282_v7 = vld [vmem:[%s1876_s1 + $0x10] sm:$0xff] (!%p240_p2)  ;;  %p270_p3 = scmp.lt.s32.totalorder (!%p240_p2), %s1303_s6, 15  ;;  %vm493_vm0 = vcmask (!%p240_p2), 261120  }
   0x9   : > { %383 = vperm.xlu1 (!%p240_p2), %1403, %v377_v1   ;;  %286 = vperm.xlu0 (!%p240_p2), %1402, %v280_v2   ;;  %v380_v8 = vld [vmem:[%s1877_s2 + $0x18] sm:$0xff] (!%p240_p2)  ;;  %v379_v9 = vld [vmem:[%s1877_s2 + $0x10] sm:$0xff] (!%p240_p2)  ;;  %v470_v10 = vld [vmem:[%s1879_s4 + $0x8] sm:$0xff] (!%p240_p2)  ;;  %v1636_v17 = vshrl.u32 (!%p240_p2), %v305_v16, 7 }
   0xa   : > { %v469_v11 = vld [vmem:[%s1879_s4] sm:$0xff] (!%p240_p2)  ;;  %v472_v12 = vld [vmem:[%s1879_s4 + $0x18] sm:$0xff] (!%p240_p2)  ;;  %v471_v13 = vld [vmem:[%s1879_s4 + $0x10] sm:$0xff] (!%p240_p2)  ;;  %570 = vmatprep.mubr.f32.mxu0 (!%p240_p2), %v1541_v15  ;;  %659 = vmatprep.mubr.f32.mxu1 (!%p240_p2), %v1541_v15 }
   0xb   : > { %v895_v14 = vld [vmem:[#allocation2] sm:$0x1] (!%p240_p2)  ;;  %v311_v18 = vsub.s32 (!%p240_p2), 1, %v1636_v17  ;;  %v319_v19 = vsub.s32 (!%p240_p2), 3, %v1636_v17  ;;  %v307_v21 = vsub.s32 (!%p240_p2), 0, %v1636_v17  ;;  %v315_v22 = vsub.s32 (!%p240_p2), 2, %v1636_v17 }
   0xc   : > { %v327_v40 = vsub.s32 (!%p240_p2), 5, %v1636_v17  ;;  %v335_v49 = vsub.s32 (!%p240_p2), 7, %v1636_v17  ;;  %v323_v51 = vsub.s32 (!%p240_p2), 4, %v1636_v17  ;;  %v331_v52 = vsub.s32 (!%p240_p2), 6, %v1636_v17 }
   0xd   : > { %388 = vperm.xlu1 (!%p240_p2), %1403, %v378_v4   ;;  %291 = vperm.xlu0 (!%p240_p2), %1402, %v281_v5  }
   0xf   : > { %s1884_s6 = smov (!%p270_p3, %s1303_s6), 15 }
  0x10   : > { %s272_s9 = scalar_lea.vmem %s1875_s0, %s1884_s6  ;;  %s277_s21 = scalar_lea.vmem %s1882_s7, %s1884_s6 }
  0x11   : > { %301 = vperm.xlu1 %1403, %v283_v6   ;;  %296 = vperm.xlu0 %1402, %v282_v7   ;;  %v1644_v20 = vld [vmem:[%s272_s9] sm:$0xff] }
  0x12   : > { %v312_v23 = vrot.slane %v1644_v20, %v311_v18  ;;  %v320_v24 = vrot.slane %v1644_v20, %v319_v19  ;;  %v308_v25 = vrot.slane %v1644_v20, %v307_v21  ;;  %v316_v26 = vrot.slane %v1644_v20, %v315_v22 }
  0x13   : > { %v1687_v53 = vrot.slane %v1644_v20, %v327_v40  ;;  %v1699_v61 = vrot.slane %v1644_v20, %v335_v49  ;;  %v1705_v1 = vrot.slane %v1644_v20, %v323_v51 }
  0x15   : > { %398 = vperm.xlu1 %1403, %v380_v8   ;;  %393 = vperm.xlu0 %1402, %v379_v9  }
  0x19   : > { %480 = vperm.xlu1 %1403, %v470_v10   ;;  %475 = vperm.xlu0 %1402, %v469_v11  }
  0x1d   : > { %490 = vperm.xlu1 %1403, %v472_v12   ;;  %485 = vperm.xlu0 %1402, %v471_v13   ;;  %v1718_v12 = vrot.slane %v1644_v20, %v331_v52 }
  0x21   : > { %898 = vperm.xlu0 %1402, %v895_v14  }
  0x88   : > { %v1654_v27 = vpop.permute.xlu1 %383  ;;  %v1656_v28 = vpop.permute.xlu0 %286 }
  0x89   : > { %v346_v29 = vmul.f32 %v312_v23, %v1656_v28  ;;  %v348_v30 = vmul.f32 %v320_v24, %v1656_v28  ;;  %v345_v31 = vmul.f32 %v308_v25, %v1656_v28  ;;  %v347_v32 = vmul.f32 %v316_v26, %v1656_v28 }
  0x8a   : > { %v350_v6 = vmul.f32 %v1687_v53, %v1656_v28  ;;  %v352_v14 = vmul.f32 %v1699_v61, %v1656_v28 }
  0x8b   : > { %v402_v33 = vadd.f32 %v1654_v27, %v346_v29  ;;  %v404_v34 = vadd.f32 %v1654_v27, %v348_v30  ;;  %v401_v37 = vadd.f32 %v1654_v27, %v345_v31  ;;  %v403_v39 = vadd.f32 %v1654_v27, %v347_v32 }
  0x8c   : > { %v1664_v35 = vpop.permute.xlu1 %388  ;;  %v1666_v36 = vpop.permute.xlu0 %291  ;;  %v406_v20 = vadd.f32 %v1654_v27, %v350_v6  ;;  %v351_v30 = vmul.f32 %v1718_v12, %v1656_v28  ;;  %v408_v32 = vadd.f32 %v1654_v27, %v352_v14 }
  0x8d   : > { %v354_v38 = vmul.f32 %v312_v23, %v1666_v36  ;;  %1404 = vtanh.f32 %v402_v33  ;;  %v356_v41 = vmul.f32 %v320_v24, %v1666_v36  ;;  %v353_v42 = vmul.f32 %v308_v25, %v1666_v36 }
  0x8e   : > { %v355_v43 = vmul.f32 %v316_v26, %v1666_v36  ;;  %1406 = vtanh.f32 %v404_v34  ;;  %v358_v10 = vmul.f32 %v1687_v53, %v1666_v36  ;;  %v360_v19 = vmul.f32 %v1699_v61, %v1666_v36 }
  0x8f   : > { %v410_v44 = vadd.f32 %v1664_v35, %v354_v38  ;;  %v412_v47 = vadd.f32 %v1664_v35, %v356_v41  ;;  %v409_v48 = vadd.f32 %v1664_v35, %v353_v42  ;;  %1408 = vtanh.f32 %v401_v37 }
  0x90   : > { %v1676_v45 = vpop.permute.xlu1 %301  ;;  %v1678_v46 = vpop.permute.xlu0 %296  ;;  %v411_v50 = vadd.f32 %v1664_v35, %v355_v43  ;;  %1410 = vtanh.f32 %v403_v39  ;;  %v359_v34 = vmul.f32 %v1718_v12, %v1666_v36  ;;  %v416_v38 = vadd.f32 %v1664_v35, %v360_v19 }
  0x91   : > { %1412 = vtanh.f32 %v410_v44  ;;  %v362_v54 = vmul.f32 %v312_v23, %v1678_v46  ;;  %v370_v55 = vmul.f32 %v312_v23, %v1676_v45  ;;  %v364_v56 = vmul.f32 %v320_v24, %v1678_v46 }
  0x92   : > { %1414 = vtanh.f32 %v412_v47  ;;  %v372_v59 = vmul.f32 %v320_v24, %v1676_v45  ;;  %v361_v60 = vmul.f32 %v308_v25, %v1678_v46  ;;  %v369_v3 = vmul.f32 %v308_v25, %v1676_v45 }
  0x93   : > { %1416 = vtanh.f32 %v409_v48  ;;  %v363_v5 = vmul.f32 %v316_v26, %v1678_v46  ;;  %v371_v9 = vmul.f32 %v316_v26, %v1676_v45  ;;  %v349_v23 = vmul.f32 %v1705_v1, %v1656_v28 }
  0x94   : > { %v1692_v57 = vpop.permute.xlu1 %398  ;;  %v1694_v58 = vpop.permute.xlu0 %393  ;;  %1418 = vtanh.f32 %v411_v50  ;;  %v357_v25 = vmul.f32 %v1705_v1, %v1666_v36  ;;  %v414_v26 = vadd.f32 %v1664_v35, %v358_v10  ;;  %v407_v36 = vadd.f32 %v1654_v27, %v351_v30 }
  0x95   : > { %v418_v62 = vadd.f32 %v1694_v58, %v362_v54  ;;  %v426_v63 = vadd.f32 %v1692_v57, %v370_v55  ;;  %v420_v0 = vadd.f32 %v1694_v58, %v364_v56  ;;  %v428_v2 = vadd.f32 %v1692_v57, %v372_v59 }
  0x96   : > { %v417_v4 = vadd.f32 %v1694_v58, %v361_v60  ;;  %v425_v8 = vadd.f32 %v1692_v57, %v369_v3  ;;  %v419_v13 = vadd.f32 %v1694_v58, %v363_v5  ;;  %v427_v18 = vadd.f32 %v1692_v57, %v371_v9  ;;  %v1767_v9 = vld [vmem:[%s1878_s3] sm:$0xff] }
  0x97   : > { %1420 = vtanh.f32 %v418_v62  ;;  %v1405_v7 = vpop.eup %1404  ;;  %v405_v41 = vadd.f32 %v1654_v27, %v349_v23  ;;  %v413_v42 = vadd.f32 %v1664_v35, %v357_v25  ;;  %v366_v44 = vmul.f32 %v1687_v53, %v1678_v46 }
  0x98   : > { %1422 = vtanh.f32 %v426_v63  ;;  %v1407_v11 = vpop.eup %1406  ;;  %v415_v48 = vadd.f32 %v1664_v35, %v359_v34  ;;  %v374_v49 = vmul.f32 %v1687_v53, %v1676_v45  ;;  %v368_v54 = vmul.f32 %v1699_v61, %v1678_v46 }
  0x99   : > { %1424 = vtanh.f32 %v420_v0  ;;  %v1409_v16 = vpop.eup %1408  ;;  %v422_v52 = vadd.f32 %v1694_v58, %v366_v44  ;;  %v376_v56 = vmul.f32 %v1699_v61, %v1676_v45  ;;  %v365_v35 = vmul.f32 %v1705_v1, %v1678_v46 }
  0x9a   : > { %1426 = vtanh.f32 %v428_v2  ;;  %v1411_v22 = vpop.eup %1410  ;;  %v430_v55 = vadd.f32 %v1692_v57, %v374_v49  ;;  %v424_v60 = vadd.f32 %v1694_v58, %v368_v54  ;;  %v373_v63 = vmul.f32 %v1705_v1, %v1676_v45  ;;  %v1821_v49 = vpop.permute.xlu1 %480 }
  0x9b   : > { %1428 = vtanh.f32 %v417_v4  ;;  %v1413_v24 = vpop.eup %1412  ;;  %v432_v0 = vadd.f32 %v1692_v57, %v376_v56  ;;  %v367_v61 = vmul.f32 %v1718_v12, %v1678_v46  ;;  %v421_v4 = vadd.f32 %v1694_v58, %v365_v35 }
  0x9c   : > { %1430 = vtanh.f32 %v425_v8  ;;  %v1415_v29 = vpop.eup %1414  ;;  %v1327_v31 = vpack.c.bf16 %v1413_v24, %v1405_v7  ;;  %v375_v6 = vmul.f32 %v1718_v12, %v1676_v45  ;;  %v429_v7 = vadd.f32 %v1692_v57, %v373_v63  ;;  %v467_v24 = vld [vmem:[%s1878_s3 + $0x10] sm:$0xff] }
  0x9d   : > { %1432 = vtanh.f32 %v419_v13  ;;  %v1417_v33 = vpop.eup %1416  ;;  %v1335_v37 = vpack.c.bf16 %v1415_v29, %v1407_v11  ;;  %v423_v46 = vadd.f32 %v1694_v58, %v367_v61  ;;  %v466_v58 = vld [vmem:[%s1878_s3 + $0x8] sm:$0xff] }
  0x9e   : > { %1434 = vtanh.f32 %v427_v18  ;;  %v1419_v39 = vpop.eup %1418  ;;  %1328 = vmatprep.subr.bf16.mxu0 %v1327_v31  ;;  %v1329_v40 = vpack.c.bf16 %v1417_v33, %v1409_v16  ;;  %v431_v11 = vadd.f32 %v1692_v57, %v375_v6  ;;  %v468_v33 = vld [vmem:[%s1878_s3 + $0x18] sm:$0xff] }
  0x9f   : > { %1436 = vtanh.f32 %v406_v20  ;;  %1336 = vmatprep.subr.bf16.mxu1 %v1335_v37  ;;  %v1337_v28 = vpack.c.bf16 %v1419_v39, %v1411_v22 }
  0xa0   : > { %1438 = vtanh.f32 %v414_v26  ;;  %1330 = vmatpush1.bf16.msra.mxu0 %v1329_v40 }
  0xa1   : > { %v1421_v43 = vpop.eup %1420  ;;  %1440 = vtanh.f32 %v408_v32  ;;  %1338 = vmatpush1.bf16.msra.mxu1 %v1337_v28 }
  0xa2   : > { %v1423_v47 = vpop.eup %1422  ;;  %1442 = vtanh.f32 %v416_v38 }
  0xa3   : > { %v1425_v50 = vpop.eup %1424  ;;  %v1331_v51 = vpack.c.bf16 %v1423_v47, %v1421_v43  ;;  %1444 = vtanh.f32 %v405_v41  ;;  %v1816_v41 = vpop.permute.xlu0 %475 }
  0xa4   : > { %v1427_v27 = vpop.eup %1426  ;;  %1446 = vtanh.f32 %v413_v42 }
  0xa5   : > { %v1429_v59 = vpop.eup %1428  ;;  %1332 = vmatprep.subr.bf16.mxu0 %v1331_v51  ;;  %v1339_v53 = vpack.c.bf16 %v1427_v27, %v1425_v50  ;;  %1448 = vtanh.f32 %v407_v36 }
  0xa6   : > { %v1431_v62 = vpop.eup %1430  ;;  %1450 = vtanh.f32 %v415_v48 }
  0xa7   : > { %v1433_v2 = vpop.eup %1432  ;;  %1340 = vmatprep.subr.bf16.mxu1 %v1339_v53  ;;  %v1333_v3 = vpack.c.bf16 %v1431_v62, %v1429_v59  ;;  %1452 = vtanh.f32 %v422_v52  ;;  %v1827_v35 = vpop.permute.xlu0 %485 }
  0xa8   : > { %v1435_v5 = vpop.eup %1434  ;;  %1454 = vtanh.f32 %v430_v55 }
  0xa9   : > { %v1437_v1 = vpop.eup %1436  ;;  %1334 = vmatpush1.bf16.msra.mxu0 %v1333_v3  ;;  %v1341_v8 = vpack.c.bf16 %v1435_v5, %v1433_v2  ;;  %1456 = vtanh.f32 %v424_v60 }
  0xaa   : > { %v1439_v10 = vpop.eup %1438  ;;  %1458 = vtanh.f32 %v432_v0 }
  0xab   : > { %v1441_v45 = vpop.eup %1440  ;;  %1342 = vmatpush1.bf16.msra.mxu1 %v1341_v8  ;;  %v1343_v12 = vpack.c.bf16 %v1439_v10, %v1437_v1  ;;  %1460 = vtanh.f32 %v421_v4  ;;  %v1833_v4 = vpop.permute.xlu1 %490 }
  0xac   : > { %v1443_v13 = vpop.eup %1442  ;;  %1305 = vmatmul.mubr.msk.f32.vlgmr.msra.gmra.mrb[0].mxu0 %vm493_vm0, %v1767_v9  ;;  %1462 = vtanh.f32 %v429_v7 }
  0xad   : > { %v1445_v14 = vpop.eup %1444  ;;  %1344 = vmatprep.subr.bf16.mxu0 %v1343_v12  ;;  %v1351_v16 = vpack.c.bf16 %v1443_v13, %v1441_v45  ;;  %576 = vmatprep.mubr.f32.mxu0 %v1541_v15  ;;  %1464 = vtanh.f32 %v423_v46 }
  0xae   : > { %v1447_v57 = vpop.eup %1446  ;;  %1309 = vmatmul.mubr.msk.f32.vlgmr.msra.gmra.mrb[0].mxu1 %vm493_vm0, %v1767_v9  ;;  %1466 = vtanh.f32 %v431_v11 }
  0xaf   : > { %v1449_v18 = vpop.eup %1448  ;;  %1352 = vmatprep.subr.bf16.mxu1 %v1351_v16  ;;  %v1345_v19 = vpack.c.bf16 %v1447_v57, %v1445_v14  ;;  %665 = vmatprep.mubr.f32.mxu1 %v1541_v15 }
  0xb0   : > { %v1451_v22 = vpop.eup %1450  ;;  %1306 = vmatmul.mubr.msk.f32.gmra.mrb[2].mxu0 %vm493_vm0, %v466_v58 }
  0xb1   : > { %v1453_v23 = vpop.eup %1452  ;;  %1346 = vmatpush1.bf16.msra.mxu0 %v1345_v19  ;;  %v1353_v20 = vpack.c.bf16 %v1451_v22, %v1449_v18  ;;  %582 = vmatprep.mubr.f32.mxu0 %v1541_v15 }
  0xb2   : > { %v1455_v25 = vpop.eup %1454  ;;  %1310 = vmatmul.mubr.msk.f32.gmra.mrb[2].mxu1 %vm493_vm0, %v466_v58 }
  0xb3   : > { %v1457_v26 = vpop.eup %1456  ;;  %1354 = vmatpush1.bf16.msra.mxu1 %v1353_v20  ;;  %v1347_v29 = vpack.c.bf16 %v1455_v25, %v1453_v23  ;;  %671 = vmatprep.mubr.f32.mxu1 %v1541_v15 }
  0xb4   : > { %v1459_v30 = vpop.eup %1458  ;;  %1307 = vmatmul.mubr.msk.f32.gmra.mrb[4].mxu0 %vm493_vm0, %v467_v24 }
  0xb5   : > { %v1461_v31 = vpop.eup %1460  ;;  %1348 = vmatprep.subr.bf16.mxu0 %v1347_v29  ;;  %v1355_v32 = vpack.c.bf16 %v1459_v30, %v1457_v26  ;;  %588 = vmatprep.mubr.f32.mxu0 %v1541_v15 }
  0xb6   : > { %v1463_v34 = vpop.eup %1462  ;;  %1311 = vmatmul.mubr.msk.f32.gmra.mrb[4].mxu1 %vm493_vm0, %v467_v24 }
  0xb7   : > { %v1465_v37 = vpop.eup %1464  ;;  %1356 = vmatprep.subr.bf16.mxu1 %v1355_v32  ;;  %v1349_v38 = vpack.c.bf16 %v1463_v34, %v1461_v31  ;;  %677 = vmatprep.mubr.f32.mxu1 %v1541_v15 }
  0xb8   : > { %v1467_v39 = vpop.eup %1466  ;;  %1308 = vmatmul.mubr.msk.f32.gmra.mrb[6].mxu0 %vm493_vm0, %v468_v33 }
  0xb9   : > { %1350 = vmatpush1.bf16.msra.mxu0 %v1349_v38  ;;  %v1357_v40 = vpack.c.bf16 %v1467_v39, %v1465_v37  ;;  %748 = vmatprep.mubr.f32.mxu0 %v1541_v15 }
  0xba   : > { %1312 = vmatmul.mubr.msk.f32.gmra.mrb[6].mxu1 %vm493_vm0, %v468_v33 }
  0xbb   : > { %1358 = vmatpush1.bf16.msra.mxu1 %v1357_v40  ;;  %837 = vmatprep.mubr.f32.mxu1 %v1541_v15 }
  0xbc   : > { %1313 = vmatmul.mubr.msk.f32.vlgmr.msra.gmra.mrb[8].mxu0 %vm493_vm0, %v1767_v9 }
  0xbd   : > { %754 = vmatprep.mubr.f32.mxu0 %v1541_v15 }
  0xbe   : > { %1317 = vmatmul.mubr.msk.f32.vlgmr.msra.gmra.mrb[8].mxu1 %vm493_vm0, %v1767_v9 }
  0xbf   : > { %843 = vmatprep.mubr.f32.mxu1 %v1541_v15 }
  0xc0   : > { %1314 = vmatmul.mubr.msk.f32.gmra.mrb[10].mxu0 %vm493_vm0, %v466_v58 }
  0xc1   : > { %760 = vmatprep.mubr.f32.mxu0 %v1541_v15 }
  0xc2   : > { %1318 = vmatmul.mubr.msk.f32.gmra.mrb[10].mxu1 %vm493_vm0, %v466_v58 }
  0xc3   : > { %849 = vmatprep.mubr.f32.mxu1 %v1541_v15 }
  0xc4   : > { %1315 = vmatmul.mubr.msk.f32.gmra.mrb[12].mxu0 %vm493_vm0, %v467_v24 }
  0xc5   : > { %766 = vmatprep.mubr.f32.mxu0 %v1541_v15 }
  0xc6   : > { %1319 = vmatmul.mubr.msk.f32.gmra.mrb[12].mxu1 %vm493_vm0, %v467_v24 }
  0xc7   : > { %855 = vmatprep.mubr.f32.mxu1 %v1541_v15 }
  0xc8   : > { %1316 = vmatmul.mubr.msk.f32.gmra.mrb[14].mxu0 %vm493_vm0, %v468_v33 }
  0xc9   : > { %972 = vmatprep.mubr.f32.mxu0 %v1541_v15 }
  0xca   : > { %1320 = vmatmul.mubr.msk.f32.gmra.mrb[14].mxu1 %vm493_vm0, %v468_v33 }
  0xcb   : > { %1043 = vmatprep.mubr.f32.mxu1 %v1541_v15 }
 0x17f   : > { %v572_v28 = vpop.f32.mrb[0].mxu0 }
 0x180   : > { %v573_v42 = vadd.f32 %v572_v28, %v1816_v41  ;;  %v574_v43 = vpop.f32.mrb[1].mxu0 }
 0x181   : > { %v661_v36 = vpop.f32.mrb[0].mxu1  ;;  %v575_v44 = vadd.f32 %v574_v43, %v1816_v41 }
 0x182   : > { %1468 = vtanh.f32 %v573_v42  ;;  %v662_v47 = vadd.f32 %v661_v36, %v1816_v41  ;;  %v663_v48 = vpop.f32.mrb[1].mxu1 }
 0x183   : > { %1470 = vtanh.f32 %v575_v44  ;;  %v664_v50 = vadd.f32 %v663_v48, %v1816_v41  ;;  %v578_v51 = vpop.f32.mrb[2].mxu0 }
 0x184   : > { %1472 = vtanh.f32 %v662_v47  ;;  %v579_v52 = vadd.f32 %v578_v51, %v1821_v49  ;;  %v580_v54 = vpop.f32.mrb[3].mxu0 }
 0x185   : > { %1474 = vtanh.f32 %v664_v50  ;;  %v667_v27 = vpop.f32.mrb[2].mxu1  ;;  %v581_v55 = vadd.f32 %v580_v54, %v1821_v49 }
 0x186   : > { %1476 = vtanh.f32 %v579_v52  ;;  %v668_v56 = vadd.f32 %v667_v27, %v1821_v49  ;;  %v669_v59 = vpop.f32.mrb[3].mxu1 }
 0x187   : > { %1478 = vtanh.f32 %v581_v55  ;;  %v670_v53 = vadd.f32 %v669_v59, %v1821_v49  ;;  %v584_v60 = vpop.f32.mrb[4].mxu0 }
 0x188   : > { %1480 = vtanh.f32 %v668_v56  ;;  %v585_v62 = vadd.f32 %v584_v60, %v1827_v35  ;;  %v586_v63 = vpop.f32.mrb[5].mxu0 }
 0x189   : > { %1482 = vtanh.f32 %v670_v53  ;;  %v673_v0 = vpop.f32.mrb[4].mxu1  ;;  %v587_v2 = vadd.f32 %v586_v63, %v1827_v35 }
 0x18a   : > { %1484 = vtanh.f32 %v585_v62  ;;  %v674_v61 = vadd.f32 %v673_v0, %v1827_v35  ;;  %v675_v3 = vpop.f32.mrb[5].mxu1 }
 0x18b   : > { %1486 = vtanh.f32 %v587_v2  ;;  %v676_v5 = vadd.f32 %v675_v3, %v1827_v35  ;;  %v590_v6 = vpop.f32.mrb[6].mxu0 }
 0x18c   : > { %v1469_v7 = vpop.eup %1468  ;;  %1488 = vtanh.f32 %v674_v61  ;;  %v591_v1 = vadd.f32 %v590_v6, %v1833_v4  ;;  %v592_v8 = vpop.f32.mrb[7].mxu0 }
 0x18d   : > { %v1471_v9 = vpop.eup %1470  ;;  %1490 = vtanh.f32 %v676_v5  ;;  %v679_v46 = vpop.f32.mrb[6].mxu1  ;;  %v593_v10 = vadd.f32 %v592_v8, %v1833_v4 }
 0x18e   : > { %v1473_v11 = vpop.eup %1472  ;;  %1492 = vtanh.f32 %v591_v1  ;;  %v680_v45 = vadd.f32 %v679_v46, %v1833_v4  ;;  %v681_v12 = vpop.f32.mrb[7].mxu1 }
 0x18f   : > { %v1475_v13 = vpop.eup %1474  ;;  %1494 = vtanh.f32 %v593_v10  ;;  %v682_v14 = vadd.f32 %v681_v12, %v1833_v4  ;;  %v750_v16 = vpop.f32.mrb[8].mxu0 }
 0x190   : > { %v1477_v58 = vpop.eup %1476  ;;  %1496 = vtanh.f32 %v680_v45  ;;  %v751_v57 = vadd.f32 %v750_v16, %v1816_v41  ;;  %v752_v18 = vpop.f32.mrb[9].mxu0 }
 0x191   : > { %v1479_v19 = vpop.eup %1478  ;;  %1498 = vtanh.f32 %v682_v14  ;;  %v839_v22 = vpop.f32.mrb[8].mxu1  ;;  %v753_v23 = vadd.f32 %v752_v18, %v1816_v41  ;;  %v1361_v20 = vpack.c.bf16 %v1477_v58, %v1469_v7 }
 0x192   : > { %v1481_v24 = vpop.eup %1480  ;;  %1500 = vtanh.f32 %v751_v57  ;;  %v840_v25 = vadd.f32 %v839_v22, %v1816_v41  ;;  %v841_v26 = vpop.f32.mrb[9].mxu1  ;;  %v1359_v29 = vpack.c.bf16 %v1479_v19, %v1471_v9  ;;  %v894_v9 = vld [vmem:[%s1880_s5] sm:$0x1] }
 0x193   : > { %v1483_v30 = vpop.eup %1482  ;;  %1502 = vtanh.f32 %v753_v23  ;;  %v842_v31 = vadd.f32 %v841_v26, %v1816_v41  ;;  %v756_v32 = vpop.f32.mrb[10].mxu0  ;;  %v1369_v33 = vpack.c.bf16 %v1481_v24, %v1473_v11 }
 0x194   : > { %v1485_v34 = vpop.eup %1484  ;;  %1504 = vtanh.f32 %v840_v25  ;;  %v757_v37 = vadd.f32 %v756_v32, %v1821_v49  ;;  %v758_v38 = vpop.f32.mrb[11].mxu0  ;;  %1360 = vmatprep.subr.bf16.mxu0 %v1359_v29  ;;  %v1367_v39 = vpack.c.bf16 %v1483_v30, %v1475_v13 }
 0x195   : > { %v1487_v40 = vpop.eup %1486  ;;  %1506 = vtanh.f32 %v842_v31  ;;  %v845_v28 = vpop.f32.mrb[10].mxu1  ;;  %v759_v42 = vadd.f32 %v758_v38, %v1821_v49  ;;  %1362 = vmatpush1.bf16.msra.mxu0 %v1361_v20 }
 0x196   : > { %v1489_v43 = vpop.eup %1488  ;;  %1508 = vtanh.f32 %v757_v37  ;;  %v846_v36 = vadd.f32 %v845_v28, %v1821_v49  ;;  %v847_v41 = vpop.f32.mrb[11].mxu1  ;;  %1368 = vmatprep.subr.bf16.mxu1 %v1367_v39 }
 0x197   : > { %v1491_v44 = vpop.eup %1490  ;;  %1510 = vtanh.f32 %v759_v42  ;;  %v848_v47 = vadd.f32 %v847_v41, %v1821_v49  ;;  %1370 = vmatpush1.bf16.msra.mxu1 %v1369_v33  ;;  %v762_v48 = vpop.f32.mrb[12].mxu0 }
 0x198   : > { %v1493_v50 = vpop.eup %1492  ;;  %1512 = vtanh.f32 %v846_v36  ;;  %v763_v51 = vadd.f32 %v762_v48, %v1827_v35  ;;  %v764_v52 = vpop.f32.mrb[13].mxu0 }
 0x199   : > { %v1495_v54 = vpop.eup %1494  ;;  %1514 = vtanh.f32 %v848_v47  ;;  %v851_v27 = vpop.f32.mrb[12].mxu1  ;;  %v765_v55 = vadd.f32 %v764_v52, %v1827_v35  ;;  %v1365_v56 = vpack.c.bf16 %v1493_v50, %v1485_v34 }
 0x19a   : > { %v1497_v59 = vpop.eup %1496  ;;  %1516 = vtanh.f32 %v763_v51  ;;  %v852_v53 = vadd.f32 %v851_v27, %v1827_v35  ;;  %v853_v60 = vpop.f32.mrb[13].mxu1  ;;  %v1363_v62 = vpack.c.bf16 %v1495_v54, %v1487_v40 }
 0x19b   : > { %v1499_v49 = vpop.eup %1498  ;;  %1518 = vtanh.f32 %v765_v55  ;;  %v854_v63 = vadd.f32 %v853_v60, %v1827_v35  ;;  %v768_v0 = vpop.f32.mrb[14].mxu0  ;;  %v1373_v2 = vpack.c.bf16 %v1497_v59, %v1489_v43 }
 0x19c   : > { %v1501_v61 = vpop.eup %1500  ;;  %1520 = vtanh.f32 %v852_v53  ;;  %v769_v3 = vadd.f32 %v768_v0, %v1833_v4  ;;  %v770_v5 = vpop.f32.mrb[15].mxu0  ;;  %1364 = vmatprep.subr.bf16.mxu0 %v1363_v62  ;;  %v1371_v6 = vpack.c.bf16 %v1499_v49, %v1491_v44 }
 0x19d   : > { %v1503_v7 = vpop.eup %1502  ;;  %1522 = vtanh.f32 %v854_v63  ;;  %v857_v1 = vpop.f32.mrb[14].mxu1  ;;  %v771_v8 = vadd.f32 %v770_v5, %v1833_v4  ;;  %1366 = vmatpush1.bf16.msra.mxu0 %v1365_v56 }
 0x19e   : > { %v1505_v35 = vpop.eup %1504  ;;  %1524 = vtanh.f32 %v769_v3  ;;  %v858_v46 = vadd.f32 %v857_v1, %v1833_v4  ;;  %v859_v10 = vpop.f32.mrb[15].mxu1  ;;  %1372 = vmatprep.subr.bf16.mxu1 %v1371_v6 }
 0x19f   : > { %v1507_v11 = vpop.eup %1506  ;;  %1526 = vtanh.f32 %v771_v8  ;;  %v860_v45 = vadd.f32 %v859_v10, %v1833_v4  ;;  %1374 = vmatpush1.bf16.msra.mxu1 %v1373_v2  ;;  %v899_v37 = vpop.permute.xlu0 %898 }
 0x1a0   : > { %v1509_v12 = vpop.eup %1508  ;;  %1528 = vtanh.f32 %v858_v46  ;;  %1321 = vmatmul.mubr.msk.f32.vlgmr.msra.gmra.mrb[16].mxu0 %vm493_vm0, %v894_v9  ;;  %v904_v39 = vrot.slane %v899_v37, %v307_v21 }
 0x1a1   : > { %v1511_v13 = vpop.eup %1510  ;;  %1530 = vtanh.f32 %v860_v45  ;;  %v1377_v14 = vpack.c.bf16 %v1509_v12, %v1501_v61  ;;  %1114 = vmatprep.mubr.f32.mxu0 %v1541_v15 }
 0x1a2   : > { %v1513_v16 = vpop.eup %1512  ;;  %1322 = vmatmul.mubr.msk.f32.vlgmr.msra.gmra.mrb[16].mxu1 %vm493_vm0, %v894_v9  ;;  %v1375_v58 = vpack.c.bf16 %v1511_v13, %v1503_v7 }
 0x1a3   : > { %v1515_v57 = vpop.eup %1514  ;;  %v1385_v18 = vpack.c.bf16 %v1513_v16, %v1505_v35  ;;  %1185 = vmatprep.mubr.f32.mxu1 %v1541_v15  ;;  %v1542_v15 = vmov 1966171168  }
 0x1a4   : > { %v1517_v19 = vpop.eup %1516  ;;  %1376 = vmatprep.subr.bf16.mxu0 %v1375_v58  ;;  %v1383_v4 = vpack.c.bf16 %v1515_v57, %v1507_v11  ;;  %v1205_v34 = vunpack.c.l.s4 %v1542_v15 }
 0x1a5   : > { %v1519_v22 = vpop.eup %1518  ;;  %1378 = vmatpush1.bf16.msra.mxu0 %v1377_v14 }
 0x1a6   : > { %v1521_v23 = vpop.eup %1520  ;;  %1384 = vmatprep.subr.bf16.mxu1 %v1383_v4  ;;  %v1206_v38 = vunpack.c.0.s8 %v1205_v34 }
 0x1a7   : > { %v1523_v20 = vpop.eup %1522  ;;  %1386 = vmatpush1.bf16.msra.mxu1 %v1385_v18 }
 0x1a8   : > { %v1525_v24 = vpop.eup %1524  ;;  %v1209_v41 = vsub.s32 %v1206_v38, %v1636_v17 }
 0x1a9   : > { %v1527_v25 = vpop.eup %1526  ;;  %v1381_v26 = vpack.c.bf16 %v1525_v24, %v1517_v19 }
 0x1aa   : > { %v1529_v29 = vpop.eup %1528  ;;  %v1379_v30 = vpack.c.bf16 %v1527_v25, %v1519_v22 }
 0x1ab   : > { %v1531_v31 = vpop.eup %1530  ;;  %v1389_v32 = vpack.c.bf16 %v1529_v29, %v1521_v23 }
 0x1ac   : > { %1380 = vmatprep.subr.bf16.mxu0 %v1379_v30  ;;  %v1387_v33 = vpack.c.bf16 %v1531_v31, %v1523_v20 }
 0x1ad   : > { %1382 = vmatpush1.bf16.msra.mxu0 %v1381_v26 }
 0x1ae   : > { %1388 = vmatprep.subr.bf16.mxu1 %v1387_v33 }
 0x1af   : > { %1390 = vmatpush1.bf16.msra.mxu1 %v1389_v32 }
 0x1b0   : > { %1323 = vmatmul.mubr.msk.f32.vlgmr.msra.gmra.mrb[18].mxu0 %vm493_vm0, %v894_v9 }
 0x1b2   : > { %1324 = vmatmul.mubr.msk.f32.vlgmr.msra.gmra.mrb[18].mxu1 %vm493_vm0, %v894_v9 }
 0x273   : > { %v974_v40 = vpop.f32.mrb[16].mxu0 }
 0x274   : > { %v975_v28 = vadd.f32 %v974_v40, %v904_v39  ;;  %v976_v42 = vpop.f32.mrb[17].mxu0 }
 0x275   : > { %v1045_v43 = vpop.f32.mrb[16].mxu1  ;;  %v977_v36 = vadd.f32 %v976_v42, %v904_v39 }
 0x276   : > { %v1046_v44 = vadd.f32 %v1045_v43, %v904_v39  ;;  %v1047_v47 = vpop.f32.mrb[17].mxu1 }
 0x277   : > { %v1200_v48 = vcombine.low %v975_v28, %v977_v36  ;;  %v1048_v50 = vadd.f32 %v1047_v47, %v904_v39 }
 0x279   : > { %v1210_v51 = vrot.slane %v1200_v48, %v1209_v41  ;;  %v1201_v52 = vcombine.low %v1046_v44, %v1048_v50 }
 0x27b   : > { %v1217_v54 = vrot.slane %v1201_v52, %v1209_v41 }
 0x27d   : > { %v1232_v27 = vcombine.low %v1210_v51, %v1217_v54 }
 0x27f   : > { %v1240_v3 = vrot.slane %v1232_v27, %v1209_v41 }
 0x283   : > { %v1116_v55 = vpop.f32.mrb[18].mxu0 }
 0x284   : > { %v1117_v56 = vadd.f32 %v1116_v55, %v904_v39  ;;  %v1118_v59 = vpop.f32.mrb[19].mxu0 }
 0x285   : > { %v1187_v21 = vpop.f32.mrb[18].mxu1  ;;  %v1119_v53 = vadd.f32 %v1118_v59, %v904_v39 }
 0x286   : > { %v1188_v60 = vadd.f32 %v1187_v21, %v904_v39  ;;  %v1189_v62 = vpop.f32.mrb[19].mxu1 }
 0x287   : > { %v1202_v49 = vcombine.low %v1117_v56, %v1119_v53  ;;  %v1190_v63 = vadd.f32 %v1189_v62, %v904_v39 }
 0x289   : > { %v1224_v0 = vrot.slane %v1202_v49, %v1209_v41  ;;  %v1203_v17 = vcombine.low %v1188_v60, %v1190_v63 }
 0x28b   : > { %v1231_v2 = vrot.slane %v1203_v17, %v1209_v41 }
 0x28d   : > { %v1233_v61 = vcombine.low %v1224_v0, %v1231_v2 }
 0x28f   : > { %v1247_v5 = vrot.slane %v1233_v61, %v1209_v41 }
 0x291   : > { %v1248_v6 = vcombine.low %v1240_v3, %v1247_v5 }
 0x293   : > { %1250 = vst [vmem:[%s277_s21] sm:$0xff] %v1248_v6 }
 0x294 PF: > { %s19_s26 = sadd.s32 1, %s1538_s26  }
 0x295   : > { %p16_p4 = scmp.ge.s32.totalorder %s19_s26, 4  }
 0x297   :  { %18 = sbr.rel (!%p16_p4) target bundleno = 3 (0x3), region = 78 }

</bundles_post_ra>
